<compile_context>
chip_gen: v6e
topology: v6e:2x2x1
jax: 0.10.0
libtpu: 0.0.40
codegen_flags: <defaults>
</compile_context>

<pallas_src>
import jax
import jax.numpy as jnp
from jax.experimental import pallas as pl
from jax.experimental.pallas import tpu as pltpu

_TARGET_BLOCK_BYTES = 4 * 1024 * 1024   # ~4 MiB of input per block (dtype-aware)
_MIN_PARALLEL_BYTES = 1 * 1024 * 1024   # above this, force >= 2 grid steps (v7x megacore)
_VMEM_LIMIT_BYTES = 48 * 1024 * 1024    # < 64 MiB v7x physical VMEM; fine on v5e/v6e


def _round_up(x: int, m: int) -> int:
    return ((x + m - 1) // m) * m


def _swish_kernel(beta_ref, x_ref, o_ref):
    # beta_ref: SMEM scalar-prefetch ref, shape (1,) f32. x_ref/o_ref: VMEM tiles.
    beta = beta_ref[0]
    xf = x_ref[...].astype(jnp.float32)          # f32 compute, bf16-safe
    z = beta * xf
    # sigmoid(z) = 0.5 * (1 + tanh(0.5 * z)): exact, one EUP op per element,
    # free under the HBM roofline, no exp overflow for large negative z.
    sig = 0.5 * (jnp.tanh(0.5 * z) + 1.0)
    o_ref[...] = (xf * sig).astype(o_ref.dtype)


def _swish_2d(x2d: jax.Array, beta_arr: jax.Array, block_rows: int, lanes: int) -> jax.Array:
    rows = x2d.shape[0]
    grid = (pl.cdiv(rows, block_rows),)
    return pl.pallas_call(
        _swish_kernel,
        out_shape=jax.ShapeDtypeStruct(x2d.shape, x2d.dtype),
        grid_spec=pltpu.PrefetchScalarGridSpec(
            num_scalar_prefetch=1,                                  # beta -> SMEM
            grid=grid,
            in_specs=[pl.BlockSpec((block_rows, lanes), lambda i, beta: (i, 0))],
            out_specs=pl.BlockSpec((block_rows, lanes), lambda i, beta: (i, 0)),
        ),
        compiler_params=pltpu.CompilerParams(
            dimension_semantics=("parallel",),   # shards across v7x's 2 TCs when grid >= 2
            vmem_limit_bytes=_VMEM_LIMIT_BYTES,
        ),
    )(beta_arr, x2d)


def swish(x: jax.Array, beta) -> jax.Array:
    """Elementwise x * sigmoid(beta * x). `beta` is a scalar parameter."""
    orig_shape = x.shape
    dtype = x.dtype
    itemsize = x.dtype.itemsize
    row_mult = {4: 8, 2: 16, 1: 32}.get(itemsize, 8)   # sublane packing granularity
    beta_arr = jnp.asarray(beta, dtype=jnp.float32).reshape(1)

    flat = x.reshape(-1)
    n = flat.shape[0]

    # Pick the widest lane width that divides n -> lane-dense, unmasked stores,
    # zero pad/slice HBM traffic in the common (conv activation) case.
    lanes = None
    for cand in (1024, 512, 256, 128):
        if n % cand == 0:
            lanes = cand
            break

    if lanes is None:
        # Ragged case: kernel on the 128-aligned prefix, tiny (<128 elem) tail in
        # plain JAX.  Avoids the full-array jnp.pad + trailing-slice HBM passes.
        n_main = (n // 128) * 128
        tail_f = flat[n_main:].astype(jnp.float32)
        tail_out = (tail_f * jax.nn.sigmoid(beta_arr[0] * tail_f)).astype(dtype)
        if n_main == 0:
            return tail_out.reshape(orig_shape)
        head_out = swish(flat[:n_main], beta)            # n_main % 128 == 0 -> kernel path
        return jnp.concatenate([head_out, tail_out]).reshape(orig_shape)

    rows = n // lanes
    x2d = flat.reshape(rows, lanes)
    slab_bytes = n * itemsize

    # Dtype-aware target: ~_TARGET_BLOCK_BYTES of input per block.
    target_rows = max(row_mult, _TARGET_BLOCK_BYTES // (lanes * itemsize))
    num_blocks = pl.cdiv(rows, target_rows)
    if slab_bytes > _MIN_PARALLEL_BYTES:
        # Guarantee >= 2 grid steps so the "parallel" axis can use both v7x TCs.
        num_blocks = max(num_blocks, 2)

    if num_blocks <= 1:
        # Single block spanning all rows (valid even if rows % row_mult != 0,
        # since the block equals the full array dim).
        block_rows = rows
    else:
        # Balanced blocks: avoid a huge block followed by a tiny tail block.
        block_rows = _round_up(pl.cdiv(rows, num_blocks), row_mult)

    out2d = _swish_2d(x2d, beta_arr, block_rows, lanes)
    return out2d.reshape(orig_shape)


if __name__ == "__main__":
    key = jax.random.PRNGKey(0)

    # Shapes consistent with a small NCHW conv activation: batch=2, C=4, H=W=16.
    x = jax.random.normal(key, (2, 4, 16, 16), dtype=jnp.float32)
    beta = jnp.float32(1.0)   # matches nn.Parameter(torch.tensor(1.0))

    y = jax.block_until_ready(swish(x, beta))
    ref = x * jax.nn.sigmoid(beta * x)
    assert y.shape == x.shape and y.dtype == x.dtype
    assert jnp.max(jnp.abs(y - ref)) < 1e-5   # exact sigmoid (tanh form) -> tight tol

    # Exercise the ragged path (n % 128 != 0): prefix via kernel, tail via plain JAX.
    xr = jax.random.normal(jax.random.PRNGKey(1), (3, 131), dtype=jnp.float32)
    yr = jax.block_until_ready(swish(xr, beta))
    refr = xr * jax.nn.sigmoid(beta * xr)
    assert yr.shape == xr.shape and jnp.max(jnp.abs(yr - refr)) < 1e-5

    print("KERNEL_OK")
</pallas_src>

<mosaic_0001>
module attributes {stable_mosaic.version = 11 : i64} {
  func.func @_swish_kernel(%arg0: i32, %arg1: memref<1xf32, #tpu.memory_space<smem>>, %arg2: memref<2x1024xf32, #tpu.memory_space<vmem>>, %arg3: memref<2x1024xf32, #tpu.memory_space<vmem>>) attributes {dimension_semantics = [#tpu.dimension_semantics<parallel>], iteration_bounds = array<i64: 1>, scalar_prefetch = 1 : i64, scratch_operands = 0 : i64, tpu.core_type = #tpu.core_type<tc>, window_params = [{transform_indices = @transform_0, window_bounds = array<i64: 2, 1024>}, {transform_indices = @transform_1, window_bounds = array<i64: 2, 1024>}]} {
    %c0 = arith.constant 0 : index
    %0 = memref.load %arg1[%c0] : memref<1xf32, #tpu.memory_space<smem>>
    %c0_0 = arith.constant 0 : index
    %c0_1 = arith.constant 0 : index
    %1 = vector.load %arg2[%c0_0, %c0_1] : memref<2x1024xf32, #tpu.memory_space<vmem>>, vector<2x1024xf32>
    %2 = vector.broadcast %0 : f32 to vector<2x1024xf32>
    %3 = arith.mulf %2, %1 : vector<2x1024xf32>
    %cst = arith.constant 5.000000e-01 : f32
    %4 = vector.broadcast %cst : f32 to vector<2x1024xf32>
    %5 = arith.mulf %4, %3 : vector<2x1024xf32>
    %6 = math.tanh %5 : vector<2x1024xf32>
    %cst_2 = arith.constant 1.000000e+00 : f32
    %7 = vector.broadcast %cst_2 : f32 to vector<2x1024xf32>
    %8 = arith.addf %6, %7 : vector<2x1024xf32>
    %cst_3 = arith.constant 5.000000e-01 : f32
    %9 = vector.broadcast %cst_3 : f32 to vector<2x1024xf32>
    %10 = arith.mulf %9, %8 : vector<2x1024xf32>
    %11 = arith.mulf %1, %10 : vector<2x1024xf32>
    %c0_4 = arith.constant 0 : index
    %c0_5 = arith.constant 0 : index
    %12 = vector.load %arg3[%c0_4, %c0_5] : memref<2x1024xf32, #tpu.memory_space<vmem>>, vector<2x1024xf32>
    tpu.vector_store %arg3[%c0_4, %c0_5], %11 {strides = array<i32>} : memref<2x1024xf32, #tpu.memory_space<vmem>>, vector<2x1024xf32>,
    return
  }
  func.func @transform_0(%arg0: i32, %arg1: memref<1xf32, #tpu.memory_space<smem>>) -> (i32, i32) {
    %c0_i32 = arith.constant 0 : i32
    %c0_i32_0 = arith.constant 0 : i32
    return %arg0, %c0_i32 : i32, i32
  }
  func.func @transform_1(%arg0: i32, %arg1: memref<1xf32, #tpu.memory_space<smem>>) -> (i32, i32) {
    %c0_i32 = arith.constant 0 : i32
    %c0_i32_0 = arith.constant 0 : i32
    return %arg0, %c0_i32 : i32, i32
  }
}

</mosaic_0001>

<bundles_post_ra>
// kernel: tpu_custom_call.1
= control target key start
LH: loop header
LB: loop body
LE: loop exit
PB: predicated region body
PF: predicated region fallthrough
CT: control target
= control target key end

     0   :  { %8 = vsyncpa [#allocation5], 0  ;;  %s132_s0 = inlined_call_operand.<no memory space> [shape: f32[1], index: 0, kind: input, shape index: {}]   ;;  %s133_s1 = inlined_call_operand.hbm [shape: f32[2,1024], index: 1, kind: input, shape index: {}]   ;;  %s134_s2 = inlined_call_operand.hbm [shape: f32[2,1024], index: 2, kind: output, shape index: {}]  }
   0x1   :  { %9 = vsyncpa [#allocation6], 0  ;;  %s106_s9 = smov [#allocation4]  }
   0x2   :  { %s16_s10 = sshll.u32 %s106_s9, 4  ;;  %s17_s10 = int_to_ptr.vmem [resolvable:$true] %s16_s10 }
   0x3   :  { %s70_s11 = scalar_lea.vmem %s17_s10, 256  ;;  %p75_p1 = scmp.lt.s32.totalorder %s17_s10, %s17_s10 }
   0x4   :  { %p71_p0 = scmp.ne.s32.totalorder %s17_s10, %s70_s11  ;;  %p76_p2 = scmp.lt.s32.totalorder %s70_s11, %s70_s11 }
   0x6   :  { %p77_p3 = por %p76_p2, %p75_p1 }
   0x8   :  { %p78_p4 = pnand %p77_p3, %p71_p0 }
   0xa   :  { %81 = shalt.err (!%p78_p4)
}
   0xb   :  { %19 = dma.hbm_to_vmem [thread:$0]  %s133_s1, 256, %s17_s10, [#allocation5]  }
   0xc   :  { %102 = dma.done.wait [#allocation5], 256  }
   0xd   :  { %103 = vsyncadd [#allocation5], 4294967040  ;;  %v26_v0 = vstv %s132_s0  ;;  %v24_v1 = vld [vmem:[#allocation4] sm:$0xff]  ;;  %v25_v2 = vld [vmem:[#allocation4 + $0x8] sm:$0xff]  ;;  %s107_s1 = smov [#allocation7]  }
   0xe   :  { %v27_v3 = vmul.f32 %v26_v0, %v24_v1  ;;  %v28_v4 = vmul.f32 %v26_v0, %v25_v2  ;;  %s47_s16 = sshll.u32 %s107_s1, 4  ;;  %s48_s16 = int_to_ptr.vmem [resolvable:$true] %s47_s16 }
   0xf   :  { %s82_s0 = scalar_lea.vmem %s48_s16, 256  ;;  %p87_p6 = scmp.lt.s32.totalorder %s48_s16, %s48_s16 }
  0x10   :  { %v29_v5 = vmul.f32 0.5, %v27_v3  ;;  %v30_v6 = vmul.f32 0.5, %v28_v4  ;;  %p83_p5 = scmp.ne.s32.totalorder %s48_s16, %s82_s0  ;;  %p88_p7 = scmp.lt.s32.totalorder %s82_s0, %s82_s0 }
  0x12   :  { %58 = vtanh.f32 %v29_v5  ;;  %p89_p8 = por %p88_p7, %p87_p6 }
  0x13   :  { %60 = vtanh.f32 %v30_v6 }
  0x14   :  { %p90_p9 = pnand %p89_p8, %p83_p5 }
  0x1f   :  { %v59_v7 = vpop.eup %58 }
  0x20   :  { %v61_v8 = vpop.eup %60  ;;  %v33_v9 = vadd.f32 1.0, %v59_v7 }
  0x21   :  { %v34_v10 = vadd.f32 1.0, %v61_v8 }
  0x22   :  { %v35_v11 = vmul.f32 0.5, %v33_v9 }
  0x23   :  { %v36_v12 = vmul.f32 0.5, %v34_v10 }
  0x24   :  { %v37_v13 = vmul.f32 %v35_v11, %v24_v1 }
  0x25   :  { %v38_v14 = vmul.f32 %v36_v12, %v25_v2 }
  0x26   :  { %39 = vst [vmem:[#allocation7] sm:$0xff] %v37_v13 }
  0x27   :  { %40 = vst [vmem:[#allocation7 + $0x8] sm:$0xff] %v38_v14 }
  0x28   :  { %93 = shalt.err (!%p90_p9)
}
  0x29   :  { %50 = dma.vmem_to_hbm [thread:$0]  %s48_s16, 256, %s134_s2, [#allocation6]  }
  0x2a   :  { %104 = dma.done.wait [#allocation6], 256  }
  0x2b   :  { %105 = vsyncadd [#allocation6], 4294967040 }
  0x2c   :  { %54 = vsyncpa [#allocation5], 1 }
  0x2d   :  { %55 = vsyncpa [#allocation6], 1 }

</bundles_post_ra>
